<compile_context>
chip_gen: v5e
topology: v5e:2x2
jax: 0.10.0
libtpu: 0.0.40
codegen_flags: <defaults>
</compile_context>

<pallas_src>
import functools

import jax
import jax.numpy as jnp
from jax.experimental import pallas as pl
from jax.experimental.pallas import tpu as pltpu


_EPS = 1e-8
_LANE = 128


def _inv_norm(w, x, y, z):
    # 1 / clamp(||q||, min=eps)  ==  rsqrt(max(|q|^2, eps^2))   (EUP rsqrt)
    n2 = w * w + x * x + y * y + z * z
    return jax.lax.rsqrt(jnp.maximum(n2, jnp.float32(_EPS * _EPS)))


def _quaternion_loss_block_kernel(q1p_ref, q2p_ref, q1t_ref, q2t_ref,
                                  out_ref, *, loss_type):
    # Each input ref is (4, R, 128): 4 component planes, lane-dense (R, 128).
    p1w, p1x, p1y, p1z = q1p_ref[0], q1p_ref[1], q1p_ref[2], q1p_ref[3]
    p2w, p2x, p2y, p2z = q2p_ref[0], q2p_ref[1], q2p_ref[2], q2p_ref[3]
    t1w, t1x, t1y, t1z = q1t_ref[0], q1t_ref[1], q1t_ref[2], q1t_ref[3]
    t2w, t2x, t2y, t2z = q2t_ref[0], q2t_ref[1], q2t_ref[2], q2t_ref[3]

    inv_p1 = _inv_norm(p1w, p1x, p1y, p1z)
    inv_p2 = _inv_norm(p2w, p2x, p2y, p2z)
    inv_t1 = _inv_norm(t1w, t1x, t1y, t1z)
    inv_t2 = _inv_norm(t2w, t2x, t2y, t2z)

    if loss_type == "mse":
        dot1 = (p1w * t1w + p1x * t1x + p1y * t1y + p1z * t1z) * (inv_p1 * inv_t1)
        dot2 = (p2w * t2w + p2x * t2x + p2y * t2y + p2z * t2z) * (inv_p2 * inv_t2)
        dot1 = jnp.clip(dot1, -1.0, 1.0)
        dot2 = jnp.clip(dot2, -1.0, 1.0)
        contrib = (dot1 - 1.0) ** 2 + (dot2 - 1.0) ** 2
    else:  # 'relative'
        # rel = q2 * conj(q1); conjugation folded into signs, components kept
        # as separate lane-dense planes (no stack / concat).
        def rel(aw, ax, ay, az, bw, bx, by, bz):
            rw = aw * bw + ax * bx + ay * by + az * bz
            rx = -aw * bx + ax * bw - ay * bz + az * by
            ry = -aw * by + ax * bz + ay * bw - az * bx
            rz = -aw * bz - ax * by + ay * bx + az * bw
            return rw, rx, ry, rz

        rpw, rpx, rpy, rpz = rel(p2w, p2x, p2y, p2z, p1w, p1x, p1y, p1z)
        rtw, rtx, rty, rtz = rel(t2w, t2x, t2y, t2z, t1w, t1x, t1y, t1z)
        dot_raw = rpw * rtw + rpx * rtx + rpy * rty + rpz * rtz
        # Normalization factors of all four quaternions factor out of the
        # bilinear quaternion products.
        dot = jnp.abs(dot_raw) * (inv_p1 * inv_p2 * inv_t1 * inv_t2)
        contrib = 1.0 - dot

    # Per-block partial sum: reduce the sublane axis only; the lane axis stays
    # dense (1, 128).  Final (tiny) reduction happens in the wrapper.
    out_ref[...] = jnp.sum(contrib, axis=0, keepdims=True)


def quaternion_loss(q1_pred, q2_pred, q1_true, q2_true,
                    loss_type="mse", block_rows=16):
    """Mean quaternion loss, matching the PyTorch QuaternionLoss forward."""
    assert loss_type in ("mse", "relative")
    n = q1_pred.shape[0]
    block_n = block_rows * _LANE
    padded_n = ((n + block_n - 1) // block_n) * block_n
    num_blocks = padded_n // block_n
    row_blocks = padded_n // _LANE  # = num_blocks * block_rows

    def prep(q):
        q = q.astype(jnp.float32)
        pad = padded_n - n
        if pad:
            # Identity quaternions contribute exactly 0 to both loss types.
            ident = jnp.zeros((pad, 4), jnp.float32).at[:, 0].set(1.0)
            q = jnp.concatenate([q, ident], axis=0)
        # SoA: (padded_n, 4) -> (4, padded_n) -> (4, padded_n//128, 128)
        return q.T.reshape(4, row_blocks, _LANE)

    inputs = [prep(q) for q in (q1_pred, q2_pred, q1_true, q2_true)]

    kernel = functools.partial(_quaternion_loss_block_kernel,
                               loss_type=loss_type)
    in_spec = pl.BlockSpec((4, block_rows, _LANE), lambda i: (0, i, 0))

    flops_per_quat = 60 if loss_type == "mse" else 115
    cost = pl.CostEstimate(
        flops=flops_per_quat * padded_n,
        transcendentals=4 * padded_n,                       # 4 rsqrt per quat
        bytes_accessed=4 * 16 * padded_n + 4 * _LANE * num_blocks,
    )

    partials = pl.pallas_call(
        kernel,
        out_shape=jax.ShapeDtypeStruct((num_blocks, _LANE), jnp.float32),
        grid=(num_blocks,),
        in_specs=[in_spec] * 4,
        out_specs=pl.BlockSpec((1, _LANE), lambda i: (i, 0)),
        compiler_params=pltpu.CompilerParams(
            dimension_semantics=("parallel",)),
        cost_estimate=cost,
    )(*inputs)

    denom = jnp.float32(2 * n if loss_type == "mse" else n)
    return jnp.sum(partials) / denom


# ---------------------------------------------------------------------------
# Pure-JAX reference (mirror of the PyTorch module) for a sanity check.
# ---------------------------------------------------------------------------
def _normalize_ref(q):
    nrm = jnp.sqrt(jnp.sum(q * q, axis=-1, keepdims=True))
    return q / jnp.maximum(nrm, _EPS)


def _quat_conjugate_ref(q):
    return jnp.concatenate([q[..., 0:1], -q[..., 1:]], axis=-1)


def _quat_multiply_ref(q, r):
    w1, x1, y1, z1 = q[..., 0], q[..., 1], q[..., 2], q[..., 3]
    w2, x2, y2, z2 = r[..., 0], r[..., 1], r[..., 2], r[..., 3]
    w = w1 * w2 - x1 * x2 - y1 * y2 - z1 * z2
    x = w1 * x2 + x1 * w2 + y1 * z2 - z1 * y2
    y = w1 * y2 - x1 * z2 + y1 * w2 + z1 * x2
    z = w1 * z2 + x1 * y2 - y1 * x2 + z1 * w2
    return jnp.stack((w, x, y, z), axis=-1)


def _reference_loss(q1p, q2p, q1t, q2t, loss_type="mse"):
    q1p, q2p, q1t, q2t = map(_normalize_ref, (q1p, q2p, q1t, q2t))
    if loss_type == "mse":
        dot1 = jnp.clip(jnp.sum(q1p * q1t, axis=-1), -1.0, 1.0)
        dot2 = jnp.clip(jnp.sum(q2p * q2t, axis=-1), -1.0, 1.0)
        dots = jnp.concatenate([dot1, dot2], axis=0)
        return jnp.mean((dots - 1.0) ** 2)
    rel_pred = _quat_multiply_ref(q2p, _quat_conjugate_ref(q1p))
    rel_true = _quat_multiply_ref(q2t, _quat_conjugate_ref(q1t))
    dot = jnp.abs(jnp.sum(rel_pred * rel_true, axis=-1))
    return jnp.mean(1.0 - dot)


if __name__ == "__main__":
    key = jax.random.PRNGKey(0)
    k1, k2, k3, k4 = jax.random.split(key, 4)
    N = 8  # batch of quaternions
    q1_pred = jax.random.normal(k1, (N, 4), dtype=jnp.float32)
    q2_pred = jax.random.normal(k2, (N, 4), dtype=jnp.float32)
    q1_true = jax.random.normal(k3, (N, 4), dtype=jnp.float32)
    q2_true = jax.random.normal(k4, (N, 4), dtype=jnp.float32)

    ok = True
    for lt in ("mse", "relative"):
        out = quaternion_loss(q1_pred, q2_pred, q1_true, q2_true, loss_type=lt)
        out = jax.block_until_ready(out)
        ref = _reference_loss(q1_pred, q2_pred, q1_true, q2_true, loss_type=lt)
        if not jnp.allclose(out, ref, atol=1e-5, rtol=1e-5):
            ok = False
            print(f"MISMATCH ({lt}): kernel={out} ref={ref}")

    if ok:
        print("KERNEL_OK")
</pallas_src>

<mosaic_0001>
module attributes {stable_mosaic.version = 11 : i64} {
  func.func @_quaternion_loss_block_kernel(%arg0: i32, %arg1: memref<4x16x128xf32, #tpu.memory_space<vmem>>, %arg2: memref<4x16x128xf32, #tpu.memory_space<vmem>>, %arg3: memref<4x16x128xf32, #tpu.memory_space<vmem>>, %arg4: memref<4x16x128xf32, #tpu.memory_space<vmem>>, %arg5: memref<1x128xf32, #tpu.memory_space<vmem>>) attributes {dimension_semantics = [#tpu.dimension_semantics<parallel>], iteration_bounds = array<i64: 1>, scalar_prefetch = 0 : i64, scratch_operands = 0 : i64, tpu.core_type = #tpu.core_type<tc>, window_params = [{transform_indices = @transform_0, window_bounds = array<i64: 4, 16, 128>}, {transform_indices = @transform_1, window_bounds = array<i64: 4, 16, 128>}, {transform_indices = @transform_2, window_bounds = array<i64: 4, 16, 128>}, {transform_indices = @transform_3, window_bounds = array<i64: 4, 16, 128>}, {transform_indices = @transform_4, window_bounds = array<i64: 1, 128>}]} {
    %c0 = arith.constant 0 : index
    %c0_0 = arith.constant 0 : index
    %c0_1 = arith.constant 0 : index
    %0 = vector.load %arg1[%c0, %c0_0, %c0_1] : memref<4x16x128xf32, #tpu.memory_space<vmem>>, vector<1x16x128xf32>
    %1 = vector.shape_cast %0 : vector<1x16x128xf32> to vector<16x128xf32>
    %c1 = arith.constant 1 : index
    %c0_2 = arith.constant 0 : index
    %c0_3 = arith.constant 0 : index
    %2 = vector.load %arg1[%c1, %c0_2, %c0_3] : memref<4x16x128xf32, #tpu.memory_space<vmem>>, vector<1x16x128xf32>
    %3 = vector.shape_cast %2 : vector<1x16x128xf32> to vector<16x128xf32>
    %c2 = arith.constant 2 : index
    %c0_4 = arith.constant 0 : index
    %c0_5 = arith.constant 0 : index
    %4 = vector.load %arg1[%c2, %c0_4, %c0_5] : memref<4x16x128xf32, #tpu.memory_space<vmem>>, vector<1x16x128xf32>
    %5 = vector.shape_cast %4 : vector<1x16x128xf32> to vector<16x128xf32>
    %c3 = arith.constant 3 : index
    %c0_6 = arith.constant 0 : index
    %c0_7 = arith.constant 0 : index
    %6 = vector.load %arg1[%c3, %c0_6, %c0_7] : memref<4x16x128xf32, #tpu.memory_space<vmem>>, vector<1x16x128xf32>
    %7 = vector.shape_cast %6 : vector<1x16x128xf32> to vector<16x128xf32>
    %c0_8 = arith.constant 0 : index
    %c0_9 = arith.constant 0 : index
    %c0_10 = arith.constant 0 : index
    %8 = vector.load %arg2[%c0_8, %c0_9, %c0_10] : memref<4x16x128xf32, #tpu.memory_space<vmem>>, vector<1x16x128xf32>
    %9 = vector.shape_cast %8 : vector<1x16x128xf32> to vector<16x128xf32>
    %c1_11 = arith.constant 1 : index
    %c0_12 = arith.constant 0 : index
    %c0_13 = arith.constant 0 : index
    %10 = vector.load %arg2[%c1_11, %c0_12, %c0_13] : memref<4x16x128xf32, #tpu.memory_space<vmem>>, vector<1x16x128xf32>
    %11 = vector.shape_cast %10 : vector<1x16x128xf32> to vector<16x128xf32>
    %c2_14 = arith.constant 2 : index
    %c0_15 = arith.constant 0 : index
    %c0_16 = arith.constant 0 : index
    %12 = vector.load %arg2[%c2_14, %c0_15, %c0_16] : memref<4x16x128xf32, #tpu.memory_space<vmem>>, vector<1x16x128xf32>
    %13 = vector.shape_cast %12 : vector<1x16x128xf32> to vector<16x128xf32>
    %c3_17 = arith.constant 3 : index
    %c0_18 = arith.constant 0 : index
    %c0_19 = arith.constant 0 : index
    %14 = vector.load %arg2[%c3_17, %c0_18, %c0_19] : memref<4x16x128xf32, #tpu.memory_space<vmem>>, vector<1x16x128xf32>
    %15 = vector.shape_cast %14 : vector<1x16x128xf32> to vector<16x128xf32>
    %c0_20 = arith.constant 0 : index
    %c0_21 = arith.constant 0 : index
    %c0_22 = arith.constant 0 : index
    %16 = vector.load %arg3[%c0_20, %c0_21, %c0_22] : memref<4x16x128xf32, #tpu.memory_space<vmem>>, vector<1x16x128xf32>
    %17 = vector.shape_cast %16 : vector<1x16x128xf32> to vector<16x128xf32>
    %c1_23 = arith.constant 1 : index
    %c0_24 = arith.constant 0 : index
    %c0_25 = arith.constant 0 : index
    %18 = vector.load %arg3[%c1_23, %c0_24, %c0_25] : memref<4x16x128xf32, #tpu.memory_space<vmem>>, vector<1x16x128xf32>
    %19 = vector.shape_cast %18 : vector<1x16x128xf32> to vector<16x128xf32>
    %c2_26 = arith.constant 2 : index
    %c0_27 = arith.constant 0 : index
    %c0_28 = arith.constant 0 : index
    %20 = vector.load %arg3[%c2_26, %c0_27, %c0_28] : memref<4x16x128xf32, #tpu.memory_space<vmem>>, vector<1x16x128xf32>
    %21 = vector.shape_cast %20 : vector<1x16x128xf32> to vector<16x128xf32>
    %c3_29 = arith.constant 3 : index
    %c0_30 = arith.constant 0 : index
    %c0_31 = arith.constant 0 : index
    %22 = vector.load %arg3[%c3_29, %c0_30, %c0_31] : memref<4x16x128xf32, #tpu.memory_space<vmem>>, vector<1x16x128xf32>
    %23 = vector.shape_cast %22 : vector<1x16x128xf32> to vector<16x128xf32>
    %c0_32 = arith.constant 0 : index
    %c0_33 = arith.constant 0 : index
    %c0_34 = arith.constant 0 : index
    %24 = vector.load %arg4[%c0_32, %c0_33, %c0_34] : memref<4x16x128xf32, #tpu.memory_space<vmem>>, vector<1x16x128xf32>
    %25 = vector.shape_cast %24 : vector<1x16x128xf32> to vector<16x128xf32>
    %c1_35 = arith.constant 1 : index
    %c0_36 = arith.constant 0 : index
    %c0_37 = arith.constant 0 : index
    %26 = vector.load %arg4[%c1_35, %c0_36, %c0_37] : memref<4x16x128xf32, #tpu.memory_space<vmem>>, vector<1x16x128xf32>
    %27 = vector.shape_cast %26 : vector<1x16x128xf32> to vector<16x128xf32>
    %c2_38 = arith.constant 2 : index
    %c0_39 = arith.constant 0 : index
    %c0_40 = arith.constant 0 : index
    %28 = vector.load %arg4[%c2_38, %c0_39, %c0_40] : memref<4x16x128xf32, #tpu.memory_space<vmem>>, vector<1x16x128xf32>
    %29 = vector.shape_cast %28 : vector<1x16x128xf32> to vector<16x128xf32>
    %c3_41 = arith.constant 3 : index
    %c0_42 = arith.constant 0 : index
    %c0_43 = arith.constant 0 : index
    %30 = vector.load %arg4[%c3_41, %c0_42, %c0_43] : memref<4x16x128xf32, #tpu.memory_space<vmem>>, vector<1x16x128xf32>
    %31 = vector.shape_cast %30 : vector<1x16x128xf32> to vector<16x128xf32>
    %32 = arith.mulf %1, %1 : vector<16x128xf32>
    %33 = arith.mulf %3, %3 : vector<16x128xf32>
    %34 = arith.addf %32, %33 : vector<16x128xf32>
    %35 = arith.mulf %5, %5 : vector<16x128xf32>
    %36 = arith.addf %34, %35 : vector<16x128xf32>
    %37 = arith.mulf %7, %7 : vector<16x128xf32>
    %38 = arith.addf %36, %37 : vector<16x128xf32>
    %cst = arith.constant 1.000000e-16 : f32
    %39 = vector.broadcast %cst : f32 to vector<16x128xf32>
    %40 = arith.maximumf %38, %39 : vector<16x128xf32>
    %41 = math.rsqrt %40 : vector<16x128xf32>
    %42 = arith.mulf %9, %9 : vector<16x128xf32>
    %43 = arith.mulf %11, %11 : vector<16x128xf32>
    %44 = arith.addf %42, %43 : vector<16x128xf32>
    %45 = arith.mulf %13, %13 : vector<16x128xf32>
    %46 = arith.addf %44, %45 : vector<16x128xf32>
    %47 = arith.mulf %15, %15 : vector<16x128xf32>
    %48 = arith.addf %46, %47 : vector<16x128xf32>
    %cst_44 = arith.constant 1.000000e-16 : f32
    %49 = vector.broadcast %cst_44 : f32 to vector<16x128xf32>
    %50 = arith.maximumf %48, %49 : vector<16x128xf32>
    %51 = math.rsqrt %50 : vector<16x128xf32>
    %52 = arith.mulf %17, %17 : vector<16x128xf32>
    %53 = arith.mulf %19, %19 : vector<16x128xf32>
    %54 = arith.addf %52, %53 : vector<16x128xf32>
    %55 = arith.mulf %21, %21 : vector<16x128xf32>
    %56 = arith.addf %54, %55 : vector<16x128xf32>
    %57 = arith.mulf %23, %23 : vector<16x128xf32>
    %58 = arith.addf %56, %57 : vector<16x128xf32>
    %cst_45 = arith.constant 1.000000e-16 : f32
    %59 = vector.broadcast %cst_45 : f32 to vector<16x128xf32>
    %60 = arith.maximumf %58, %59 : vector<16x128xf32>
    %61 = math.rsqrt %60 : vector<16x128xf32>
    %62 = arith.mulf %25, %25 : vector<16x128xf32>
    %63 = arith.mulf %27, %27 : vector<16x128xf32>
    %64 = arith.addf %62, %63 : vector<16x128xf32>
    %65 = arith.mulf %29, %29 : vector<16x128xf32>
    %66 = arith.addf %64, %65 : vector<16x128xf32>
    %67 = arith.mulf %31, %31 : vector<16x128xf32>
    %68 = arith.addf %66, %67 : vector<16x128xf32>
    %cst_46 = arith.constant 1.000000e-16 : f32
    %69 = vector.broadcast %cst_46 : f32 to vector<16x128xf32>
    %70 = arith.maximumf %68, %69 : vector<16x128xf32>
    %71 = math.rsqrt %70 : vector<16x128xf32>
    %72 = arith.mulf %1, %17 : vector<16x128xf32>
    %73 = arith.mulf %3, %19 : vector<16x128xf32>
    %74 = arith.addf %72, %73 : vector<16x128xf32>
    %75 = arith.mulf %5, %21 : vector<16x128xf32>
    %76 = arith.addf %74, %75 : vector<16x128xf32>
    %77 = arith.mulf %7, %23 : vector<16x128xf32>
    %78 = arith.addf %76, %77 : vector<16x128xf32>
    %79 = arith.mulf %41, %61 : vector<16x128xf32>
    %80 = arith.mulf %78, %79 : vector<16x128xf32>
    %81 = arith.mulf %9, %25 : vector<16x128xf32>
    %82 = arith.mulf %11, %27 : vector<16x128xf32>
    %83 = arith.addf %81, %82 : vector<16x128xf32>
    %84 = arith.mulf %13, %29 : vector<16x128xf32>
    %85 = arith.addf %83, %84 : vector<16x128xf32>
    %86 = arith.mulf %15, %31 : vector<16x128xf32>
    %87 = arith.addf %85, %86 : vector<16x128xf32>
    %88 = arith.mulf %51, %71 : vector<16x128xf32>
    %89 = arith.mulf %87, %88 : vector<16x128xf32>
    %cst_47 = arith.constant -1.000000e+00 : f32
    %cst_48 = arith.constant 1.000000e+00 : f32
    %90 = vector.broadcast %cst_47 : f32 to vector<16x128xf32>
    %91 = arith.maximumf %90, %80 : vector<16x128xf32>
    %92 = vector.broadcast %cst_48 : f32 to vector<16x128xf32>
    %93 = arith.minimumf %92, %91 : vector<16x128xf32>
    %cst_49 = arith.constant -1.000000e+00 : f32
    %cst_50 = arith.constant 1.000000e+00 : f32
    %94 = vector.broadcast %cst_49 : f32 to vector<16x128xf32>
    %95 = arith.maximumf %94, %89 : vector<16x128xf32>
    %96 = vector.broadcast %cst_50 : f32 to vector<16x128xf32>
    %97 = arith.minimumf %96, %95 : vector<16x128xf32>
    %cst_51 = arith.constant 1.000000e+00 : f32
    %98 = vector.broadcast %cst_51 : f32 to vector<16x128xf32>
    %99 = arith.subf %93, %98 : vector<16x128xf32>
    %100 = arith.mulf %99, %99 : vector<16x128xf32>
    %cst_52 = arith.constant 1.000000e+00 : f32
    %101 = vector.broadcast %cst_52 : f32 to vector<16x128xf32>
    %102 = arith.subf %97, %101 : vector<16x128xf32>
    %103 = arith.mulf %102, %102 : vector<16x128xf32>
    %104 = arith.addf %100, %103 : vector<16x128xf32>
    %cst_53 = arith.constant dense<0.000000e+00> : vector<128xf32>
    %105 = vector.multi_reduction <add>, %104, %cst_53 [0] : vector<16x128xf32> to vector<128xf32>
    %106 = vector.shape_cast %105 : vector<128xf32> to vector<1x128xf32>
    %c0_54 = arith.constant 0 : index
    %c0_55 = arith.constant 0 : index
    %107 = vector.load %arg5[%c0_54, %c0_55] : memref<1x128xf32, #tpu.memory_space<vmem>>, vector<1x128xf32>
    tpu.vector_store %arg5[%c0_54, %c0_55], %106 {strides = array<i32>} : memref<1x128xf32, #tpu.memory_space<vmem>>, vector<1x128xf32>,
    return
  }
  func.func @transform_0(%arg0: i32) -> (i32, i32, i32) {
    %c0_i32 = arith.constant 0 : i32
    %c0_i32_0 = arith.constant 0 : i32
    %c0_i32_1 = arith.constant 0 : i32
    return %c0_i32, %arg0, %c0_i32_0 : i32, i32, i32
  }
  func.func @transform_1(%arg0: i32) -> (i32, i32, i32) {
    %c0_i32 = arith.constant 0 : i32
    %c0_i32_0 = arith.constant 0 : i32
    %c0_i32_1 = arith.constant 0 : i32
    return %c0_i32, %arg0, %c0_i32_0 : i32, i32, i32
  }
  func.func @transform_2(%arg0: i32) -> (i32, i32, i32) {
    %c0_i32 = arith.constant 0 : i32
    %c0_i32_0 = arith.constant 0 : i32
    %c0_i32_1 = arith.constant 0 : i32
    return %c0_i32, %arg0, %c0_i32_0 : i32, i32, i32
  }
  func.func @transform_3(%arg0: i32) -> (i32, i32, i32) {
    %c0_i32 = arith.constant 0 : i32
    %c0_i32_0 = arith.constant 0 : i32
    %c0_i32_1 = arith.constant 0 : i32
    return %c0_i32, %arg0, %c0_i32_0 : i32, i32, i32
  }
  func.func @transform_4(%arg0: i32) -> (i32, i32) {
    %c0_i32 = arith.constant 0 : i32
    %c0_i32_0 = arith.constant 0 : i32
    return %arg0, %c0_i32 : i32, i32
  }
}

</mosaic_0001>

<bundles_post_ra>
// kernel: tpu_custom_call.1
= control target key start
LH: loop header
LB: loop body
LE: loop exit
PB: predicated region body
PF: predicated region fallthrough
CT: control target
= control target key end

     0   :  { %9 = vsyncpa [#allocation3], 0  ;;  %s857_s0 = inlined_call_operand.hbm [shape: f32[4,16,128], index: 0, kind: input, shape index: {}]   ;;  %s858_s1 = inlined_call_operand.hbm [shape: f32[4,16,128], index: 1, kind: input, shape index: {}]   ;;  %s859_s2 = inlined_call_operand.hbm [shape: f32[4,16,128], index: 2, kind: input, shape index: {}]   ;;  %s860_s3 = inlined_call_operand.hbm [shape: f32[4,16,128], index: 3, kind: input, shape index: {}]   ;;  %s861_s4 = inlined_call_operand.hbm [shape: f32[1,128], index: 4, kind: output, shape index: {}]  }
   0x1   :  { %10 = vsyncpa [#allocation6], 0 }
   0x2   :  { %11 = vsyncpa [#allocation9], 0 }
   0x3   :  { %12 = vsyncpa [#allocation4], 0  ;;  %s30_s17 = sshll.u32 %s858_s1, 4  ;;  %s509_s18 = smov [#allocation5]   ;;  %s31_s17 = int_to_ptr.hbm [resolvable:$true] %s30_s17 }
   0x4   :  { %s32_s19 = sshll.u32 %s509_s18, 4  ;;  %s17_s22 = sshll.u32 %s857_s0, 4  ;;  %s33_s19 = int_to_ptr.vmem [resolvable:$true] %s32_s19  ;;  %s18_s22 = int_to_ptr.hbm [resolvable:$true] %s17_s22 }
   0x5   :  { %s510_s23 = smov 128   ;;  %s511_s24 = smov 8  }
   0x6   :  { %38 = dma.hbm_to_vmem [thread:$0]  %s31_s17, 1024, %s33_s19, [#allocation6], %s510_s23, %s510_s23, %s511_s24  }
   0x7   :  { %s512_s25 = smov [#allocation2]   ;;  %s43_s29 = sshll.u32 %s859_s2, 4  ;;  %s44_s29 = int_to_ptr.hbm [resolvable:$true] %s43_s29 }
   0x8   :  { %s19_s26 = sshll.u32 %s512_s25, 4  ;;  %s56_s5 = sshll.u32 %s860_s3, 4  ;;  %s20_s26 = int_to_ptr.vmem [resolvable:$true] %s19_s26  ;;  %s57_s5 = int_to_ptr.hbm [resolvable:$true] %s56_s5 }
   0x9   :  { %25 = dma.hbm_to_vmem [thread:$0]  %s18_s22, 1024, %s20_s26, [#allocation3], %s510_s23, %s510_s23, %s511_s24  }
   0xa   :  { %s513_s6 = smov [#allocation7]   ;;  %s514_s0 = smov [#allocation8]  }
   0xb   :  { %s45_s7 = sshll.u32 %s513_s6, 4  ;;  %s58_s8 = sshll.u32 %s514_s0, 4  ;;  %s46_s7 = int_to_ptr.vmem [resolvable:$true] %s45_s7  ;;  %s59_s8 = int_to_ptr.vmem [resolvable:$true] %s58_s8 }
   0xc   :  { %51 = dma.hbm_to_vmem [thread:$0]  %s44_s29, 1024, %s46_s7, [#allocation6], %s510_s23, %s510_s23, %s511_s24  }
   0xd   :  { %64 = dma.hbm_to_vmem [thread:$0]  %s57_s5, 1024, %s59_s8, [#allocation9], %s510_s23, %s510_s23, %s511_s24  }
   0xe   :  { %501 = dma.done.wait [#allocation3], 1024  }
   0xf   :  { %502 = vsyncadd [#allocation3], 4294966272 }
  0x10   :  { %503 = dma.done.wait [#allocation6], 2048  }
  0x11   :  { %504 = vsyncadd [#allocation6], 4294965248 }
  0x12   :  { %505 = dma.done.wait [#allocation9], 1024  }
  0x13   :  { %506 = vsyncadd [#allocation9], 4294966272  ;;  %v553_v0 = vld [vmem:[#allocation2] sm:$0xff]  ;;  %v555_v1 = vld [vmem:[#allocation2 + $0x8] sm:$0xff]  ;;  %s515_s2 = smov [#allocation10]   ;;  %s338_s11 = sshll.u32 %s861_s4, 4  ;;  %s339_s11 = int_to_ptr.hbm [resolvable:$true] %s338_s11 }
  0x14   :  { %v557_v2 = vld [vmem:[#allocation2 + $0x10] sm:$0xff]  ;;  %v559_v3 = vld [vmem:[#allocation2 + $0x18] sm:$0xff]  ;;  %v561_v4 = vld [vmem:[#allocation2 + $0x20] sm:$0xff]  ;;  %v125_v6 = vmul.f32 %v553_v0, %v553_v0  ;;  %v126_v7 = vmul.f32 %v555_v1, %v555_v1  ;;  %s336_s3 = sshll.u32 %s515_s2, 4  ;;  %s337_s3 = int_to_ptr.vmem [resolvable:$true] %s336_s3 }
  0x15   :  { %v563_v5 = vld [vmem:[#allocation2 + $0x28] sm:$0xff]  ;;  %v127_v8 = vmul.f32 %v557_v2, %v557_v2  ;;  %v571_v9 = vld [vmem:[#allocation2 + $0x30] sm:$0xff]  ;;  %v573_v10 = vld [vmem:[#allocation2 + $0x38] sm:$0xff]  ;;  %v128_v12 = vmul.f32 %v559_v3, %v559_v3  ;;  %v131_v13 = vmul.f32 %v561_v4, %v561_v4 }
  0x16   :  { %v575_v11 = vld [vmem:[#allocation5] sm:$0xff]  ;;  %v132_v14 = vmul.f32 %v563_v5, %v563_v5  ;;  %v583_v15 = vld [vmem:[#allocation5 + $0x8] sm:$0xff]  ;;  %v585_v16 = vld [vmem:[#allocation5 + $0x10] sm:$0xff]  ;;  %v135_v19 = vmul.f32 %v571_v9, %v571_v9  ;;  %v136_v20 = vmul.f32 %v573_v10, %v573_v10 }
  0x17   :  { %v587_v17 = vld [vmem:[#allocation5 + $0x18] sm:$0xff]  ;;  %v129_v18 = vadd.f32 %v127_v8, %v125_v6  ;;  %v161_v21 = vmul.f32 %v575_v11, %v575_v11  ;;  %v595_v22 = vld [vmem:[#allocation5 + $0x20] sm:$0xff]  ;;  %v597_v23 = vld [vmem:[#allocation5 + $0x28] sm:$0xff]  ;;  %v130_v25 = vadd.f32 %v128_v12, %v126_v7  ;;  %v162_v26 = vmul.f32 %v583_v15, %v583_v15 }
  0x18   :  { %v599_v24 = vld [vmem:[#allocation5 + $0x30] sm:$0xff]  ;;  %v163_v27 = vmul.f32 %v585_v16, %v585_v16  ;;  %v164_v28 = vmul.f32 %v587_v17, %v587_v17  ;;  %v607_v29 = vld [vmem:[#allocation5 + $0x38] sm:$0xff]  ;;  %v609_v30 = vld [vmem:[#allocation7] sm:$0xff]  ;;  %v167_v33 = vmul.f32 %v595_v22, %v595_v22  ;;  %v168_v34 = vmul.f32 %v597_v23, %v597_v23 }
  0x19   :  { %v611_v31 = vld [vmem:[#allocation7 + $0x8] sm:$0xff]  ;;  %v133_v32 = vadd.f32 %v131_v13, %v129_v18  ;;  %v171_v35 = vmul.f32 %v599_v24, %v599_v24  ;;  %v619_v36 = vld [vmem:[#allocation7 + $0x10] sm:$0xff]  ;;  %v621_v37 = vld [vmem:[#allocation7 + $0x18] sm:$0xff]  ;;  %v134_v39 = vadd.f32 %v132_v14, %v130_v25  ;;  %v172_v42 = vmul.f32 %v607_v29, %v607_v29 }
  0x1a   :  { %v623_v38 = vld [vmem:[#allocation7 + $0x20] sm:$0xff]  ;;  %v165_v40 = vadd.f32 %v163_v27, %v161_v21  ;;  %v166_v41 = vadd.f32 %v164_v28, %v162_v26  ;;  %v627_v43 = vld [vmem:[#allocation7 + $0x28] sm:$0xff]  ;;  %v197_v45 = vmul.f32 %v609_v30, %v609_v30  ;;  %v198_v46 = vmul.f32 %v611_v31, %v611_v31  ;;  %v635_v48 = vld [vmem:[#allocation7 + $0x30] sm:$0xff] }
  0x1b   :  { %v137_v44 = vadd.f32 %v135_v19, %v133_v32  ;;  %v199_v47 = vmul.f32 %v619_v36, %v619_v36  ;;  %v138_v49 = vadd.f32 %v136_v20, %v134_v39  ;;  %v200_v52 = vmul.f32 %v621_v37, %v621_v37  ;;  %v645_v57 = vld [vmem:[#allocation7 + $0x38] sm:$0xff]  ;;  %v647_v58 = vld [vmem:[#allocation8] sm:$0xff]  ;;  %v651_v63 = vld [vmem:[#allocation8 + $0x8] sm:$0xff] }
  0x1c   :  { %v169_v50 = vadd.f32 %v167_v33, %v165_v40  ;;  %v170_v51 = vadd.f32 %v168_v34, %v166_v41  ;;  %v203_v55 = vmul.f32 %v623_v38, %v623_v38  ;;  %v204_v56 = vmul.f32 %v627_v43, %v627_v43  ;;  %v656_v8 = vld [vmem:[#allocation8 + $0x10] sm:$0xff]  ;;  %v663_v14 = vld [vmem:[#allocation8 + $0x18] sm:$0xff]  ;;  %v665_v18 = vld [vmem:[#allocation8 + $0x20] sm:$0xff] }
  0x1d   :  { %v639_v53 = vmax.f32 %v137_v44, 1e-16  ;;  %v201_v54 = vadd.f32 %v199_v47, %v197_v45  ;;  %v649_v59 = vmax.f32 %v138_v49, 1e-16  ;;  %v202_v62 = vadd.f32 %v200_v52, %v198_v46  ;;  %v667_v19 = vld [vmem:[#allocation8 + $0x28] sm:$0xff]  ;;  %v676_v28 = vld [vmem:[#allocation8 + $0x30] sm:$0xff] }
  0x1e   :  { %v173_v60 = vadd.f32 %v171_v35, %v169_v50  ;;  %v174_v61 = vadd.f32 %v172_v42, %v170_v51  ;;  %v207_v7 = vmul.f32 %v635_v48, %v635_v48  ;;  %v208_v21 = vmul.f32 %v645_v57, %v645_v57  ;;  %v683_v35 = vld [vmem:[#allocation8 + $0x38] sm:$0xff] }
  0x1f   :  { %365 = vrsqrt.f32 %v639_v53  ;;  %v205_v6 = vadd.f32 %v203_v55, %v201_v54  ;;  %v206_v20 = vadd.f32 %v204_v56, %v202_v62  ;;  %v233_v26 = vmul.f32 %v647_v58, %v647_v58 }
  0x20   :  { %367 = vrsqrt.f32 %v649_v59  ;;  %v659_v12 = vmax.f32 %v173_v60, 1e-16  ;;  %v661_v13 = vmax.f32 %v174_v61, 1e-16  ;;  %v234_v27 = vmul.f32 %v651_v63, %v651_v63 }
  0x21   :  { %v209_v25 = vadd.f32 %v207_v7, %v205_v6  ;;  %v210_v32 = vadd.f32 %v208_v21, %v206_v20  ;;  %v235_v34 = vmul.f32 %v656_v8, %v656_v8  ;;  %v236_v39 = vmul.f32 %v663_v14, %v663_v14 }
  0x22   :  { %369 = vrsqrt.f32 %v659_v12  ;;  %v239_v40 = vmul.f32 %v665_v18, %v665_v18  ;;  %v240_v41 = vmul.f32 %v667_v19, %v667_v19  ;;  %vm147_vm0 = vweird.f32 %v639_v53 }
  0x23   :  { %371 = vrsqrt.f32 %v661_v13  ;;  %v679_v33 = vmax.f32 %v209_v25, 1e-16  ;;  %v693_v44 = vmax.f32 %v210_v32, 1e-16  ;;  %v237_v45 = vadd.f32 %v235_v34, %v233_v26 }
  0x24   :  { %v238_v49 = vadd.f32 %v236_v39, %v234_v27  ;;  %v243_v50 = vmul.f32 %v676_v28, %v676_v28  ;;  %vm157_vm1 = vweird.f32 %v649_v59  ;;  %v244_v52 = vmul.f32 %v683_v35, %v683_v35 }
  0x25   :  { %v691_v42 = vpop.eup %365  ;;  %373 = vrsqrt.f32 %v679_v33  ;;  %vm219_vm2 = vweird.f32 %v679_v33  ;;  %v241_v56 = vadd.f32 %v239_v40, %v237_v45  ;;  %vm229_vm5 = vweird.f32 %v693_v44 }
  0x26   :  { %v696_v46 = vpop.eup %367  ;;  %v142_v47 = vmul.f32 %v691_v42, %v639_v53  ;;  %375 = vrsqrt.f32 %v693_v44  ;;  %v242_v60 = vadd.f32 %v240_v41, %v238_v49  ;;  %vm148_vm3 = vweird.f32 %v691_v42 }
  0x27   :  { %v152_v51 = vmul.f32 %v696_v46, %v649_v59  ;;  %vm158_vm4 = vweird.f32 %v696_v46  ;;  %v245_v21 = vadd.f32 %v243_v50, %v241_v56  ;;  %v269_v34 = vmul.f32 %v609_v30, %v553_v0  ;;  %vm742_vm6 = vmor %vm147_vm0, %vm148_vm3 }
  0x28   :  { %v709_v54 = vpop.eup %369  ;;  %v143_v55 = vmul.f32 %v691_v42, %v142_v47  ;;  %v246_v32 = vadd.f32 %v244_v52, %v242_v60  ;;  %v270_v45 = vmul.f32 %v611_v31, %v555_v1  ;;  %vm753_vm7 = vmor %vm157_vm1, %vm158_vm4  ;;  %vm183_vm8 = vweird.f32 %v659_v12 }
  0x29   :  { %v713_v61 = vpop.eup %371  ;;  %v153_v62 = vmul.f32 %v696_v46, %v152_v51  ;;  %v178_v6 = vmul.f32 %v709_v54, %v659_v12  ;;  %v733_v51 = vmax.f32 %v245_v21, 1e-16  ;;  %vm184_vm9 = vweird.f32 %v709_v54 }
  0x2a   :  { %v144_v7 = vmul.f32 0.5, %v143_v55  ;;  %v188_v20 = vmul.f32 %v713_v61, %v661_v13  ;;  %v735_v55 = vmax.f32 %v246_v32, 1e-16  ;;  %vm193_vm11 = vweird.f32 %v661_v13  ;;  %vm817_vm4 = vmor %vm183_vm8, %vm184_vm9 }
  0x2b   :  { %v723_v25 = vpop.eup %373  ;;  %v154_v26 = vmul.f32 0.5, %v153_v62  ;;  %v179_v27 = vmul.f32 %v709_v54, %v178_v6  ;;  %377 = vrsqrt.f32 %v733_v51  ;;  %v271_v62 = vmul.f32 %v619_v36, %v557_v2 }
  0x2c   :  { %v145_v39 = vsub.f32 1.5, %v144_v7  ;;  %v189_v40 = vmul.f32 %v713_v61, %v188_v20  ;;  %v214_v41 = vmul.f32 %v723_v25, %v679_v33  ;;  %v376_v47 = vpop.eup %375  ;;  %vm220_vm10 = vweird.f32 %v723_v25 }
  0x2d   :  { %v155_v49 = vsub.f32 1.5, %v154_v26  ;;  %v180_v50 = vmul.f32 0.5, %v179_v27  ;;  %v224_v31 = vmul.f32 %v376_v47, %v693_v44  ;;  %vm194_vm12 = vweird.f32 %v713_v61  ;;  %vm777_vm14 = vmor %vm219_vm2, %vm220_vm10 }
  0x2e   :  { %v146_v52 = vmul.f32 %v691_v42, %v145_v39  ;;  %v190_v30 = vmul.f32 0.5, %v189_v40  ;;  %v215_v1 = vmul.f32 %v723_v25, %v214_v41  ;;  %vm230_vm13 = vweird.f32 %v376_v47 }
  0x2f   :  { %v156_v56 = vmul.f32 %v696_v46, %v155_v49  ;;  %v181_v53 = vsub.f32 1.5, %v180_v50  ;;  %v225_v20 = vmul.f32 %v376_v47, %v224_v31  ;;  %379 = vrsqrt.f32 %v735_v55  ;;  %vm793_vm0 = vmor %vm229_vm5, %vm230_vm13 }
  0x30   :  { %v191_v6 = vsub.f32 1.5, %v190_v30  ;;  %v216_v7 = vmul.f32 0.5, %v215_v1  ;;  %v150_v59 = vsel %vm742_vm6, %v691_v42, %v146_v52  ;;  %vm255_vm15 = vweird.f32 %v733_v51  ;;  %vm835_vm5 = vmor %vm193_vm11, %vm194_vm12 }
  0x31   :  { %v160_v2 = vsel %vm753_vm7, %v696_v46, %v156_v56  ;;  %v773_v36 = vmul.f32 %v709_v54, %v181_v53  ;;  %v226_v26 = vmul.f32 0.5, %v225_v20  ;;  %v272_v27 = vmul.f32 %v621_v37, %v559_v3  ;;  %v378_v49 = vpop.eup %377 }
  0x32   :  { %v217_v21 = vsub.f32 1.5, %v216_v7  ;;  %v273_v32 = vadd.f32 %v271_v62, %v269_v34  ;;  %v275_v46 = vmul.f32 %v623_v38, %v561_v4  ;;  %v192_v39 = vmul.f32 %v713_v61, %v191_v6 }
  0x33   :  { %v227_v41 = vsub.f32 1.5, %v226_v26  ;;  %v276_v33 = vmul.f32 %v627_v43, %v563_v5  ;;  %v274_v3 = vadd.f32 %v272_v27, %v270_v45  ;;  %v279_v4 = vmul.f32 %v635_v48, %v571_v9 }
  0x34   :  { %v218_v40 = vmul.f32 %v723_v25, %v217_v21  ;;  %v277_v37 = vadd.f32 %v275_v46, %v273_v32  ;;  %v280_v38 = vmul.f32 %v645_v57, %v573_v10  ;;  %v250_v34 = vmul.f32 %v378_v49, %v733_v51 }
  0x35   :  { %v228_v43 = vmul.f32 %v376_v47, %v227_v41  ;;  %vm265_vm1 = vweird.f32 %v735_v55  ;;  %v380_v44 = vpop.eup %379  ;;  %vm256_vm2 = vweird.f32 %v378_v49  ;;  %v278_v52 = vadd.f32 %v276_v33, %v274_v3 }
  0x36   :  { %v222_v5 = vsel %vm777_vm14, %v723_v25, %v218_v40  ;;  %v281_v45 = vadd.f32 %v279_v4, %v277_v37  ;;  %v251_v48 = vmul.f32 %v378_v49, %v250_v34  ;;  %v260_v10 = vmul.f32 %v380_v44, %v735_v55  ;;  %vm257_vm6 = vmor %vm255_vm15, %vm256_vm2 }
  0x37   :  { %v283_v0 = vmul.f32 %v222_v5, %v150_v59  ;;  %v232_v9 = vsel %vm793_vm0, %v376_v47, %v228_v43  ;;  %v287_v57 = vmul.f32 %v647_v58, %v575_v11  ;;  %vm266_vm3 = vweird.f32 %v380_v44 }
  0x38   :  { %v282_v25 = vadd.f32 %v280_v38, %v278_v52  ;;  %v284_v30 = vmul.f32 %v232_v9, %v160_v2  ;;  %v288_v1 = vmul.f32 %v651_v63, %v583_v15  ;;  %v252_v47 = vmul.f32 0.5, %v251_v48  ;;  %vm267_vm7 = vmor %vm265_vm1, %vm266_vm3 }
  0x39   :  { %v261_v56 = vmul.f32 %v380_v44, %v260_v10  ;;  %v289_v60 = vmul.f32 %v656_v8, %v585_v16  ;;  %v290_v11 = vmul.f32 %v663_v14, %v587_v17  ;;  %v285_v58 = vmul.f32 %v283_v0, %v281_v45 }
  0x3a   :  { %v293_v15 = vmul.f32 %v665_v18, %v595_v22  ;;  %v294_v63 = vmul.f32 %v667_v19, %v597_v23  ;;  %v297_v12 = vmul.f32 %v676_v28, %v599_v24  ;;  %v253_v16 = vsub.f32 1.5, %v252_v47 }
  0x3b   :  { %v262_v17 = vmul.f32 0.5, %v261_v56  ;;  %v291_v8 = vadd.f32 %v289_v60, %v287_v57  ;;  %v292_v14 = vadd.f32 %v290_v11, %v288_v1  ;;  %v186_v22 = vsel %vm817_vm4, %v709_v54, %v773_v36 }
  0x3c   :  { %v286_v23 = vmul.f32 %v284_v30, %v282_v25  ;;  %v298_v24 = vmul.f32 %v683_v35, %v607_v29  ;;  %v254_v13 = vmul.f32 %v378_v49, %v253_v16  ;;  %v350_v62 = vclamps-f32 %v285_v58, 1.0 }
  0x3d   :  { %v263_v18 = vsub.f32 1.5, %v262_v17  ;;  %v295_v19 = vadd.f32 %v293_v15, %v291_v8  ;;  %v296_v28 = vadd.f32 %v294_v63, %v292_v14  ;;  %v196_v54 = vsel %vm835_vm5, %v713_v61, %v192_v39 }
  0x3e   :  { %v258_v6 = vsel %vm257_vm6, %v378_v49, %v254_v13  ;;  %v351_v2 = vclamps-f32 %v286_v23, 1.0  ;;  %v354_v21 = vadd.f32 -1.0, %v350_v62 }
  0x3f   :  { %v264_v51 = vmul.f32 %v380_v44, %v263_v18  ;;  %v299_v7 = vadd.f32 %v297_v12, %v295_v19  ;;  %v300_v20 = vadd.f32 %v298_v24, %v296_v28  ;;  %v301_v59 = vmul.f32 %v258_v6, %v186_v22 }
  0x40   :  { %v355_v27 = vadd.f32 -1.0, %v351_v2  ;;  %v315_v32 = vmul.f32 %v354_v21, %v354_v21 }
  0x41   :  { %v268_v29 = vsel %vm267_vm7, %v380_v44, %v264_v51  ;;  %v303_v36 = vmul.f32 %v301_v59, %v299_v7 }
  0x42   :  { %v302_v35 = vmul.f32 %v268_v29, %v196_v54  ;;  %v316_v40 = vmul.f32 %v355_v27, %v355_v27 }
  0x43   :  { %v352_v42 = vclamps-f32 %v303_v36, 1.0 }
  0x44   :  { %v304_v26 = vmul.f32 %v302_v35, %v300_v20 }
  0x45   :  { %v356_v46 = vadd.f32 -1.0, %v352_v42 }
  0x46   :  { %v353_v55 = vclamps-f32 %v304_v26, 1.0 }
  0x47   :  { %v319_v33 = vmul.f32 %v356_v46, %v356_v46 }
  0x48   :  { %v357_v41 = vadd.f32 -1.0, %v353_v55 }
  0x49   :  { %v321_v39 = vadd.f32 %v319_v33, %v315_v32 }
  0x4a   :  { %v320_v61 = vmul.f32 %v357_v41, %v357_v41 }
  0x4c   :  { %v322_v49 = vadd.f32 %v320_v61, %v316_v40 }
  0x4e   :  { %v323_v50 = vadd.f32 %v322_v49, %v321_v39 }
  0x50   :  { %v324_v3 = vrot.slane %v323_v50, 4 }
  0x52   :  { %v325_v37 = vadd.f32 %v324_v3, %v323_v50 }
  0x54   :  { %v326_v4 = vrot.slane %v325_v37, 2 }
  0x56   :  { %v327_v38 = vadd.f32 %v326_v4, %v325_v37 }
  0x58   :  { %v328_v5 = vrot.slane %v327_v38, 1 }
  0x5a   :  { %v329_v43 = vadd.f32 %v328_v5, %v327_v38 }
  0x5c   :  { %330 = vst [vmem:[#allocation10] sm:$0x1] %v329_v43 }
  0x5d   :  { %341 = dma.vmem_to_hbm [thread:$0]  %s337_s3, 16, %s339_s11, [#allocation4]  }
  0x5e   :  { %507 = dma.done.wait [#allocation4], 16  }
  0x5f   :  { %508 = vsyncadd [#allocation4], 4294967280 }
  0x60   :  { %346 = vsyncpa [#allocation3], 1 }
  0x61   :  { %347 = vsyncpa [#allocation6], 1 }
  0x62   :  { %348 = vsyncpa [#allocation9], 1 }
  0x63   :  { %349 = vsyncpa [#allocation4], 1 }

</bundles_post_ra>
